<compile_context>
chip_gen: v6e
topology: v6e:2x2x1
jax: 0.10.0
libtpu: 0.0.40
codegen_flags: <defaults>
</compile_context>

<pallas_src>
import functools

import jax
import jax.numpy as jnp
from jax import lax
from jax.experimental import pallas as pl
from jax.experimental.pallas import tpu as pltpu


def _voting_kernel(x_ref, o_ref, *, strategy: str):
    # x_ref block: (M, C, TB)  --  models x classes x batch-lanes
    x = x_ref[...].astype(jnp.float32)
    M, C, TB = x.shape

    def one_hot_argmax(t):                 # (C, TB) -> one-hot (C, TB)
        mx = jnp.max(t, axis=0, keepdims=True)
        cidx = lax.broadcasted_iota(jnp.int32, t.shape, 0)
        first = jnp.min(jnp.where(t == mx, cidx, C), axis=0, keepdims=True)
        return (cidx == first).astype(o_ref.dtype)

    def is_tied(t):                        # (C, TB) -> (1, TB) bool
        mx = jnp.max(t, axis=0, keepdims=True)
        cnt = jnp.sum((t == mx).astype(jnp.int32), axis=0, keepdims=True)
        return cnt > 1

    # ---- max_row(x): the model row whose peak score is highest -> (C, TB) ----
    row_max = jnp.max(x, axis=1)                                  # (M, TB)
    gmx = jnp.max(row_max, axis=0, keepdims=True)                 # (1, TB) global max / batch
    midx = lax.broadcasted_iota(jnp.int32, row_max.shape, 0)      # (M, TB)
    best_m = jnp.min(jnp.where(row_max == gmx, midx, M),
                     axis=0, keepdims=True)                       # (1, TB) first argmax
    sel = (midx == best_m).astype(jnp.float32)                    # (M, TB)
    max_row_t = jnp.sum(x * sel[:, None, :], axis=0)              # (C, TB)

    if strategy == 'max_row':
        t = max_row_t
    elif strategy == 'average':
        row_means_t = jnp.mean(x, axis=0)                         # (C, TB)
        # edge_case(x): the global maximum of the (M, C) score matrix is tied.
        # Tie count done in int32 (no full-size float32 temporary).
        row_eq = jnp.sum((x == gmx[:, None, :]).astype(jnp.int32), axis=1)  # (M, TB)
        tie_x = jnp.sum(row_eq, axis=0, keepdims=True) > 1                  # (1, TB)
        t = jnp.where(tie_x, max_row_t, row_means_t)
    elif strategy == 'max_column':
        row_means_t = jnp.mean(x, axis=0)                         # (C, TB)
        max_col_t = jnp.max(x, axis=0)                            # (C, TB)
        fallback = jnp.where(is_tied(row_means_t), max_row_t, row_means_t)
        t = jnp.where(is_tied(max_col_t), fallback, max_col_t)
    else:
        raise ValueError(f"Invalid strategy: {strategy}")

    o_ref[...] = one_hot_argmax(t)


def _choose_batch_tile(B, M, C, itemsize):
    """Lane-dense batch tile: multiple of 128 when possible (unmasked stores),
    sized so double-buffered input blocks stay well under the 16 MiB scoped
    VMEM floor (v5e default; v7x has only 64 MiB physical) while each buffer
    is big enough (~0.5-4 MiB) to amortize the ~0.35 us per-grid-step cost."""
    if B < 128:
        return B                           # block == full dim is always legal
    budget_bytes = 4 * 1024 * 1024         # per single input buffer
    tb = budget_bytes // max(1, M * C * itemsize)
    tb = max(128, min(tb, 16384, B))
    return (tb // 128) * 128


@functools.partial(jax.jit,
                   static_argnames=('num_models', 'num_classes', 'strategy',
                                    'out_dtype', 'block_batch'))
def voting_model(x, *, num_models: int, num_classes: int, strategy: str = 'max_row',
                 out_dtype=jnp.float32, block_batch=None):
    """x: (B, num_models * num_classes) -> votes: (B, num_classes, 1)."""
    if strategy not in ('average', 'max_row', 'max_column'):
        raise ValueError(
            f"Invalid strategy: {strategy}. Choose from 'average', 'max_row', or 'max_column'.")
    B = x.shape[0]
    M, C = num_models, num_classes

    # (B, M*C) -> (M, C, B): put the batch on the lane axis.  Input keeps its
    # native dtype (bf16/int8 inputs halve/quarter HBM read traffic compared to
    # a wrapper f32 cast); the kernel up-casts to f32 internally.
    xt = jnp.transpose(x.reshape(B, M, C), (1, 2, 0))

    TB = block_batch if block_batch is not None else _choose_batch_tile(
        B, M, C, jnp.dtype(x.dtype).itemsize)

    votes_cb = pl.pallas_call(
        functools.partial(_voting_kernel, strategy=strategy),
        out_shape=jax.ShapeDtypeStruct((C, B), out_dtype),
        grid=(pl.cdiv(B, TB),),
        in_specs=[pl.BlockSpec((M, C, TB), lambda b: (0, 0, b))],
        out_specs=pl.BlockSpec((C, TB), lambda b: (0, b)),
        compiler_params=pltpu.CompilerParams(
            dimension_semantics=("parallel",)),   # batch grid axis -> megacore split
    )(xt)

    # (C, B) -> (B, C) -> (B, C, 1)   (== votes.unsqueeze(-1) in the reference)
    return jnp.transpose(votes_cb, (1, 0))[..., None]


if __name__ == "__main__":
    key = jax.random.PRNGKey(0)
    B, M, C = 2, 4, 2                            # batch, num_models, num_classes
    x = jax.random.uniform(key, (B, M * C), dtype=jnp.float32)

    # default strategy of the module is 'max_row'
    out = voting_model(x, num_models=M, num_classes=C, strategy='max_row')
    jax.block_until_ready(out)
    assert out.shape == (B, C, 1) and out.dtype == jnp.float32
    assert bool(jnp.all(jnp.sum(out[..., 0], axis=-1) == 1.0))   # exactly one vote per row

    # exercise the other static strategies as well
    for strat in ('average', 'max_column'):
        o = voting_model(x, num_models=M, num_classes=C, strategy=strat)
        jax.block_until_ready(o)
        assert o.shape == (B, C, 1)
        assert bool(jnp.all(jnp.sum(o[..., 0], axis=-1) == 1.0))

    # exercise the batch-tiled, pipelined path (grid > 1, lane-dense blocks)
    B2 = 256
    x2 = jax.random.uniform(jax.random.PRNGKey(1), (B2, M * C), dtype=jnp.float32)
    o2 = voting_model(x2, num_models=M, num_classes=C, strategy='max_column',
                      block_batch=128)
    jax.block_until_ready(o2)
    assert o2.shape == (B2, C, 1)
    assert bool(jnp.all(jnp.sum(o2[..., 0], axis=-1) == 1.0))

    print("KERNEL_OK")
</pallas_src>

<mosaic_0001>
module attributes {stable_mosaic.version = 11 : i64} {
  func.func @_voting_kernel(%arg0: i32, %arg1: memref<4x2x2xf32, #tpu.memory_space<vmem>>, %arg2: memref<2x2xf32, #tpu.memory_space<vmem>>) attributes {dimension_semantics = [#tpu.dimension_semantics<parallel>], iteration_bounds = array<i64: 1>, scalar_prefetch = 0 : i64, scratch_operands = 0 : i64, tpu.core_type = #tpu.core_type<tc>, window_params = [{transform_indices = @transform_0, window_bounds = array<i64: 4, 2, 2>}, {transform_indices = @transform_1, window_bounds = array<i64: 2, 2>}]} {
    %c0 = arith.constant 0 : index
    %c0_0 = arith.constant 0 : index
    %c0_1 = arith.constant 0 : index
    %0 = vector.load %arg1[%c0, %c0_0, %c0_1] : memref<4x2x2xf32, #tpu.memory_space<vmem>>, vector<4x2x2xf32>
    %cst = arith.constant dense<0xFF800000> : vector<4x2xf32>
    %1 = vector.multi_reduction <maximumf>, %0, %cst [1] : vector<4x2x2xf32> to vector<4x2xf32>
    %cst_2 = arith.constant dense<0xFF800000> : vector<2xf32>
    %2 = vector.multi_reduction <maximumf>, %1, %cst_2 [0] : vector<4x2xf32> to vector<2xf32>
    %3 = vector.shape_cast %2 : vector<2xf32> to vector<1x2xf32>
    %4 = tpu.iota {dimensions = array<i32: 0>} : vector<4x2xi32>
    %5 = vector.broadcast %3 : vector<1x2xf32> to vector<4x2xf32>
    %6 = arith.cmpf oeq, %1, %5 : vector<4x2xf32>
    %c4_i32 = arith.constant 4 : i32
    %7 = vector.broadcast %c4_i32 : i32 to vector<4x2xi32>
    %8 = arith.select %6, %4, %7 : vector<4x2xi1>, vector<4x2xi32>
    %cst_3 = arith.constant dense<2147483647> : vector<2xi32>
    %9 = vector.multi_reduction <minsi>, %8, %cst_3 [0] : vector<4x2xi32> to vector<2xi32>
    %10 = vector.shape_cast %9 : vector<2xi32> to vector<1x2xi32>
    %11 = vector.broadcast %10 : vector<1x2xi32> to vector<4x2xi32>
    %12 = arith.cmpi eq, %4, %11 : vector<4x2xi32>
    %13 = arith.extui %12 : vector<4x2xi1> to vector<4x2xi32>
    %14 = arith.sitofp %13 : vector<4x2xi32> to vector<4x2xf32>
    %15 = vector.shape_cast %14 : vector<4x2xf32> to vector<4x1x2xf32>
    %16 = vector.broadcast %15 : vector<4x1x2xf32> to vector<4x2x2xf32>
    %17 = arith.mulf %0, %16 : vector<4x2x2xf32>
    %cst_4 = arith.constant dense<0.000000e+00> : vector<2x2xf32>
    %18 = vector.multi_reduction <add>, %17, %cst_4 [0] : vector<4x2x2xf32> to vector<2x2xf32>
    %cst_5 = arith.constant dense<0xFF800000> : vector<2xf32>
    %19 = vector.multi_reduction <maximumf>, %18, %cst_5 [0] : vector<2x2xf32> to vector<2xf32>
    %20 = vector.shape_cast %19 : vector<2xf32> to vector<1x2xf32>
    %21 = tpu.iota {dimensions = array<i32: 0>} : vector<2x2xi32>
    %22 = vector.broadcast %20 : vector<1x2xf32> to vector<2x2xf32>
    %23 = arith.cmpf oeq, %18, %22 : vector<2x2xf32>
    %c2_i32 = arith.constant 2 : i32
    %24 = vector.broadcast %c2_i32 : i32 to vector<2x2xi32>
    %25 = arith.select %23, %21, %24 : vector<2x2xi1>, vector<2x2xi32>
    %cst_6 = arith.constant dense<2147483647> : vector<2xi32>
    %26 = vector.multi_reduction <minsi>, %25, %cst_6 [0] : vector<2x2xi32> to vector<2xi32>
    %27 = vector.shape_cast %26 : vector<2xi32> to vector<1x2xi32>
    %28 = vector.broadcast %27 : vector<1x2xi32> to vector<2x2xi32>
    %29 = arith.cmpi eq, %21, %28 : vector<2x2xi32>
    %30 = arith.extui %29 : vector<2x2xi1> to vector<2x2xi32>
    %31 = arith.sitofp %30 : vector<2x2xi32> to vector<2x2xf32>
    %c0_7 = arith.constant 0 : index
    %c0_8 = arith.constant 0 : index
    %32 = vector.load %arg2[%c0_7, %c0_8] : memref<2x2xf32, #tpu.memory_space<vmem>>, vector<2x2xf32>
    tpu.vector_store %arg2[%c0_7, %c0_8], %31 {strides = array<i32>} : memref<2x2xf32, #tpu.memory_space<vmem>>, vector<2x2xf32>,
    return
  }
  func.func @transform_0(%arg0: i32) -> (i32, i32, i32) {
    %c0_i32 = arith.constant 0 : i32
    %c0_i32_0 = arith.constant 0 : i32
    %c0_i32_1 = arith.constant 0 : i32
    return %c0_i32, %c0_i32_0, %arg0 : i32, i32, i32
  }
  func.func @transform_1(%arg0: i32) -> (i32, i32) {
    %c0_i32 = arith.constant 0 : i32
    %c0_i32_0 = arith.constant 0 : i32
    return %c0_i32, %arg0 : i32, i32
  }
}

</mosaic_0001>

<bundles_post_ra>
// kernel: voting_model.1
= control target key start
LH: loop header
LB: loop body
LE: loop exit
PB: predicated region body
PF: predicated region fallthrough
CT: control target
= control target key end

     0   :  { %vm12_vm0 = vcmask 9216   ;;  %v49_v24 = vlaneseq  ;;  %vm41_vm1 = vcmask 15360   ;;  %vm62_vm2 = vcmask 8192   ;;  %s232_s0 = inlined_call_operand.vmem [shape: f32[4,2,2], index: 0, kind: input, shape index: {}]   ;;  %s233_s1 = inlined_call_operand.vmem [shape: f32[2,2], index: 1, kind: output, shape index: {}]  }
   0x1   :  { %v182_v0 = vld [vmem:[%s232_s0] sm:$0x3]  ;;  %v187_v1 = vld [vmem:[%s232_s0 + $0x2] sm:$0x3]  ;;  %v192_v2 = vld [vmem:[%s232_s0 + $0x4] sm:$0x3] }
   0x2   :  { %v197_v3 = vld [vmem:[%s232_s0 + $0x6] sm:$0x3]  ;;  %v13_v4 = vsel %vm12_vm0, %v182_v0, -inf  ;;  %v20_v5 = vsel %vm12_vm0, %v187_v1, -inf  ;;  %v27_v6 = vsel %vm12_vm0, %v192_v2, -inf  ;;  %v207_v33 = vshrl.u32 %v49_v24, 7 }
   0x3   :  { %v14_v7 = vrot.slane %v13_v4, 4  ;;  %v21_v8 = vrot.slane %v20_v5, 4  ;;  %v28_v9 = vrot.slane %v27_v6, 4  ;;  %v34_v10 = vsel %vm12_vm0, %v197_v3, -inf }
   0x4   :  { %v35_v11 = vrot.slane %v34_v10, 4  ;;  %v55_v40 = vrot.slane %v207_v33, 1  ;;  %v56_v41 = vrot.slane %v207_v33, 2  ;;  %v57_v42 = vrot.slane %v207_v33, 3 }
   0x5   :  { %v15_v12 = vmax.f32 %v13_v4, %v14_v7  ;;  %v22_v13 = vmax.f32 %v20_v5, %v21_v8  ;;  %v29_v14 = vmax.f32 %v27_v6, %v28_v9  ;;  %v167_v44 = vmov 1966171168  }
   0x6   :  { %v36_v15 = vmax.f32 %v34_v10, %v35_v11  ;;  %v82_v45 = vunpack.c.l.s4 %v167_v44  ;;  %v75_v55 = vsub.s32 0, %v207_v33  ;;  %v168_v61 = vmov 0.0  }
   0x7   :  { %v16_v16 = vrot.slane %v15_v12, 2  ;;  %v23_v17 = vrot.slane %v22_v13, 2  ;;  %v30_v18 = vrot.slane %v29_v14, 2 }
   0x8   :  { %v37_v19 = vrot.slane %v36_v15, 2  ;;  %v83_v56 = vunpack.c.0.s8 %v82_v45 }
   0x9   :  { %v17_v20 = vmax.f32 %v15_v12, %v16_v16  ;;  %v24_v21 = vmax.f32 %v22_v13, %v23_v17  ;;  %v31_v22 = vmax.f32 %v29_v14, %v30_v18 }
   0xa   :  { %v38_v23 = vmax.f32 %v36_v15, %v37_v19  ;;  %v86_v60 = vsub.s32 %v83_v56, %v207_v33 }
   0xb   :  { %v18_v25 = vrot.slane %v17_v20, 1  ;;  %v25_v26 = vrot.slane %v24_v21, 1  ;;  %v32_v27 = vrot.slane %v31_v22, 1 }
   0xc   :  { %v39_v28 = vrot.slane %v38_v23, 1 }
   0xd   :  { %v19_v29 = vmax.f32 %v17_v20, %v18_v25  ;;  %v26_v30 = vmax.f32 %v24_v21, %v25_v26  ;;  %v33_v31 = vmax.f32 %v31_v22, %v32_v27 }
   0xe   :  { %v40_v32 = vmax.f32 %v38_v23, %v39_v28 }
   0xf   :  { %v42_v34 = vsel %vm41_vm1, %v19_v29, -inf  ;;  %v43_v35 = vsel %vm41_vm1, %v26_v30, -inf  ;;  %v44_v36 = vsel %vm41_vm1, %v33_v31, -inf }
  0x10   :  { %v45_v37 = vsel %vm41_vm1, %v40_v32, -inf  ;;  %v46_v38 = vmax.f32 %v42_v34, %v43_v35 }
  0x11   :  { %v47_v39 = vmax.f32 %v44_v36, %v45_v37 }
  0x13   :  { %v48_v43 = vmax.f32 %v46_v38, %v47_v39 }
  0x15   :  { %vm51_vm3 = vcmp.eq.f32.partialorder %v19_v29, %v48_v43  ;;  %vm52_vm4 = vcmp.eq.f32.partialorder %v26_v30, %v48_v43  ;;  %vm53_vm5 = vcmp.eq.f32.partialorder %v33_v31, %v48_v43  ;;  %vm54_vm6 = vcmp.eq.f32.partialorder %v40_v32, %v48_v43 }
  0x16   :  { %v58_v46 = vsel %vm51_vm3, %v207_v33, 4  ;;  %v59_v47 = vsel %vm52_vm4, %v55_v40, 4  ;;  %v60_v48 = vsel %vm53_vm5, %v56_v41, 4  ;;  %v61_v49 = vsel %vm54_vm6, %v57_v42, 4 }
  0x17   :  { %v63_v50 = vsel %vm62_vm2, %v58_v46, 2147483647  ;;  %v64_v51 = vsel %vm62_vm2, %v59_v47, 2147483647  ;;  %v65_v52 = vsel %vm62_vm2, %v60_v48, 2147483647 }
  0x18   :  { %v66_v53 = vsel %vm62_vm2, %v61_v49, 2147483647  ;;  %vm67_vm7 = vcmp.lt.s32.totalorder %v63_v50, %v64_v51 }
  0x19   :  { %v68_v54 = vsel %vm67_vm7, %v63_v50, %v64_v51  ;;  %vm69_vm8 = vcmp.lt.s32.totalorder %v65_v52, %v66_v53 }
  0x1a   :  { %v70_v57 = vsel %vm69_vm8, %v65_v52, %v66_v53 }
  0x1b   :  { %vm71_vm9 = vcmp.lt.s32.totalorder %v68_v54, %v70_v57 }
  0x1c   :  { %v72_v58 = vsel %vm71_vm9, %v68_v54, %v70_v57 }
  0x1d   :  { %v76_v59 = vrot.slane %v72_v58, %v75_v55 }
  0x1f   :  { %vm77_vm10 = vcmp.eq.s32.totalorder %v207_v33, %v76_v59 }
  0x20   :  { %v163_v62 = vsel %vm77_vm10, 1.0, %v168_v61 }
  0x21   :  { %v87_v63 = vrot.slane %v163_v62, %v86_v60 }
  0x23   :  { %v88_v4 = vcombine.high %v87_v63, %v87_v63  ;;  %v95_v5 = vrot.slane %v87_v63, %v86_v60 }
  0x25   :  { %v102_v6 = vrot.slane %v88_v4, %v86_v60  ;;  %v103_v7 = vcombine.high %v95_v5, %v95_v5  ;;  %v108_v8 = vrot.slane %v95_v5, %v75_v55 }
  0x27   :  { %v104_v9 = vcombine.high %v102_v6, %v102_v6  ;;  %v112_v10 = vrot.slane %v102_v6, %v75_v55  ;;  %v116_v11 = vrot.slane %v103_v7, %v75_v55  ;;  %v125_v12 = vmul.f32 %v108_v8, %v182_v0 }
  0x29   :  { %v120_v13 = vrot.slane %v104_v9, %v75_v55  ;;  %v126_v14 = vmul.f32 %v112_v10, %v187_v1  ;;  %v127_v15 = vmul.f32 %v116_v11, %v192_v2  ;;  %v129_v16 = vsel %vm12_vm0, %v125_v12, 0.0 }
  0x2b   :  { %v128_v17 = vmul.f32 %v120_v13, %v197_v3  ;;  %v130_v18 = vsel %vm12_vm0, %v126_v14, 0.0  ;;  %v132_v19 = vsel %vm12_vm0, %v127_v15, 0.0 }
  0x2c   :  { %v131_v20 = vadd.f32 %v130_v18, %v129_v16 }
  0x2d   :  { %v134_v21 = vsel %vm12_vm0, %v128_v17, 0.0 }
  0x2e   :  { %v133_v22 = vadd.f32 %v132_v19, %v131_v20 }
  0x30   :  { %v135_v23 = vadd.f32 %v134_v21, %v133_v22 }
  0x32   :  { %v136_v0 = vsel %vm12_vm0, %v135_v23, -inf }
  0x33   :  { %v137_v24 = vrot.slane %v136_v0, 4 }
  0x35   :  { %v138_v25 = vmax.f32 %v136_v0, %v137_v24 }
  0x37   :  { %v139_v1 = vrot.slane %v138_v25, 2 }
  0x39   :  { %v140_v26 = vmax.f32 %v138_v25, %v139_v1 }
  0x3b   :  { %v141_v2 = vrot.slane %v140_v26, 1 }
  0x3d   :  { %v142_v27 = vmax.f32 %v140_v26, %v141_v2 }
  0x3f   :  { %vm143_vm11 = vcmp.eq.f32.partialorder %v135_v23, %v142_v27 }
  0x40   :  { %v144_v3 = vsel %vm143_vm11, %v207_v33, 2 }
  0x41   :  { %v145_v28 = vsel %vm12_vm0, %v144_v3, 2147483647 }
  0x42   :  { %v146_v29 = vrot.slane %v145_v28, 4 }
  0x44   :  { %vm147_vm12 = vcmp.lt.s32.totalorder %v145_v28, %v146_v29 }
  0x45   :  { %v148_v30 = vsel %vm147_vm12, %v145_v28, %v146_v29 }
  0x46   :  { %v149_v31 = vrot.slane %v148_v30, 2 }
  0x48   :  { %vm150_vm13 = vcmp.lt.s32.totalorder %v148_v30, %v149_v31 }
  0x49   :  { %v151_v32 = vsel %vm150_vm13, %v148_v30, %v149_v31 }
  0x4a   :  { %v152_v34 = vrot.slane %v151_v32, 1 }
  0x4c   :  { %vm153_vm14 = vcmp.lt.s32.totalorder %v151_v32, %v152_v34 }
  0x4d   :  { %v154_v35 = vsel %vm153_vm14, %v151_v32, %v152_v34 }
  0x4e   :  { %vm155_vm15 = vcmp.eq.s32.totalorder %v207_v33, %v154_v35 }
  0x4f   :  { %v164_v36 = vsel %vm155_vm15, 1.0, %v168_v61 }
  0x50   :  { %158 = vst.msk [vmem:[%s233_s1] sm:$0x3] %vm12_vm0, %v164_v36 }

</bundles_post_ra>
